<compile_context>
chip_gen: v6e
topology: v6e:2x2x1
jax: 0.10.0
libtpu: 0.0.40
codegen_flags: <defaults>
</compile_context>

<pallas_src>
import functools

import jax
import jax.numpy as jnp
from jax.experimental import pallas as pl
from jax.experimental.pallas import tpu as pltpu


# --------------------------------------------------------------------------
# Kernels
# --------------------------------------------------------------------------
def _basic_block_kernel_identity(x_ref, w1_ref, b1_ref, w2_ref, b2_ref, o_ref,
                                 *, chunk):
    """Stride-1 variant.  x_ref: (C, tm) compute-dtype, o_ref: (C, tm) f32.

    Body is a chunk loop over the lane dim: per chunk we compute
    relu(w2 @ relu(w1 @ x + b1) + b2 + x) and store, keeping live ranges small.
    x is re-read from the ref at each use (loads sit next to their uses).
    """
    tm = o_ref.shape[-1]
    b1 = b1_ref[...]                                        # (C, 1) f32
    b2 = b2_ref[...]
    for c in range(tm // chunk):
        sl = slice(c * chunk, (c + 1) * chunk)
        h = jnp.dot(w1_ref[...], x_ref[:, sl],
                    preferred_element_type=jnp.float32) + b1
        h = jnp.maximum(h, 0.0)                             # f32 VPU tail
        y = jnp.dot(w2_ref[...], h.astype(w2_ref.dtype),    # cast only at MXU
                    preferred_element_type=jnp.float32) + b2
        o_ref[:, sl] = jnp.maximum(
            y + x_ref[:, sl].astype(jnp.float32), 0.0).astype(o_ref.dtype)


def _basic_block_kernel_downsample(x_ref, w1_ref, b1_ref, w2_ref, b2_ref,
                                   wd_ref, bd_ref, o_ref, *, chunk):
    """Stride-2 variant (spatial subsample done in the wrapper).

    ident = wd @ x + bd is the BN-folded 1x1 downsample shortcut.
    """
    tm = o_ref.shape[-1]
    b1 = b1_ref[...]
    b2 = b2_ref[...]
    bd = bd_ref[...]
    for c in range(tm // chunk):
        sl = slice(c * chunk, (c + 1) * chunk)
        h = jnp.dot(w1_ref[...], x_ref[:, sl],
                    preferred_element_type=jnp.float32) + b1
        h = jnp.maximum(h, 0.0)
        y = jnp.dot(w2_ref[...], h.astype(w2_ref.dtype),
                    preferred_element_type=jnp.float32) + b2
        ident = jnp.dot(wd_ref[...], x_ref[:, sl],           # re-read x
                        preferred_element_type=jnp.float32) + bd
        o_ref[:, sl] = jnp.maximum(y + ident, 0.0).astype(o_ref.dtype)


# --------------------------------------------------------------------------
# Wrapper helpers
# --------------------------------------------------------------------------
def _fold_conv_bn(w, conv_bias, gamma, beta, mean, var, eps=1e-5,
                  dtype=jnp.float32):
    """Fold inference-mode BatchNorm into the preceding 1x1 conv.

    w: (Cout, Cin) channel-matmul weight (PyTorch (Cout,Cin,1,1) squeezed).
    Returns (w' in `dtype` for the MXU, b' in f32 shaped (Cout,1))."""
    scale = gamma / jnp.sqrt(var + eps)                      # (Cout,)
    w_folded = (w.astype(jnp.float32) * scale[:, None]).astype(dtype)
    b_folded = (conv_bias - mean) * scale + beta             # (Cout,)
    return w_folded, b_folded.reshape(-1, 1).astype(jnp.float32)


def _pick_tm(m, target, n_batch, min_steps):
    """Spatial (lane) tile.

    Whole per-batch extent if it fits the target, else a 128-multiple; then
    shrink (down to 128) until the grid has >= min_steps steps so v7x's second
    TensorCore gets work even at batch 1-2."""
    if m <= 128:
        return m
    tm = m if m <= target else max(128, (target // 128) * 128)
    while tm > 128 and n_batch * (-(-m // tm)) < min_steps:
        tm = max(128, ((tm // 2) // 128) * 128)
    return tm


def _pick_chunk(tm):
    """In-kernel lane sub-chunk (bounds vreg live ranges); must divide tm."""
    if tm <= 512:
        return tm
    for c in (512, 256, 128):
        if tm % c == 0:
            return c
    return tm


# --------------------------------------------------------------------------
# Forward
# --------------------------------------------------------------------------
def basic_block_forward(x_nchw, params, downsample, *, tm_target=1024,
                        compute_dtype=jnp.bfloat16, min_grid_steps=4,
                        vmem_limit_bytes=None):
    """x_nchw: (N, Cin, H, W) float32.  Returns (N, Cout, Ho, Wo) float32."""
    N, Cin, H, W = x_nchw.shape
    Cout = params["w1"].shape[0]

    if downsample:
        # stride-2 1x1 conv == spatial subsample then channel matmul.  The
        # strided slice fuses with the compute-dtype cast into one XLA pass.
        xs = x_nchw[:, :, ::2, ::2].astype(compute_dtype)
    else:
        assert Cin == Cout, ("stride-1 BasicBlock needs Cin == Cout for the "
                             "identity shortcut (PyTorch would fail the add)")
        xs = x_nchw.astype(compute_dtype)
    _, _, Ho, Wo = xs.shape
    M = Ho * Wo
    x3 = xs.reshape(N, Cin, M)

    w1, b1 = _fold_conv_bn(params["w1"], params["b1"], params["g1"],
                           params["be1"], params["m1"], params["v1"],
                           dtype=compute_dtype)
    w2, b2 = _fold_conv_bn(params["w2"], params["b2"], params["g2"],
                           params["be2"], params["m2"], params["v2"],
                           dtype=compute_dtype)

    # VMEM-aware tile cap for deep stages: keeps double-buffered x/out tiles,
    # weights and the f32 h intermediate under v5e's 16 MiB scoped default
    # and well under v7x's 64 MiB physical VMEM.
    eff_target = min(tm_target, 512) if max(Cin, Cout) >= 256 else tm_target
    tm = _pick_tm(M, eff_target, N, min_grid_steps)
    chunk = _pick_chunk(tm)
    assert tm % chunk == 0
    grid = (N, pl.cdiv(M, tm))

    x_spec = pl.BlockSpec((None, Cin, tm), lambda n, j: (n, 0, j))
    o_spec = pl.BlockSpec((None, Cout, tm), lambda n, j: (n, 0, j))

    def full2d(r, c):
        # loop-invariant operand: same block every step -> DMA'd once.
        return pl.BlockSpec((r, c), lambda n, j: (0, 0))

    if downsample:
        wd, bd = _fold_conv_bn(params["wd"], params["bd"], params["gd"],
                               params["bed"], params["md"], params["vd"],
                               dtype=compute_dtype)
        kernel = functools.partial(_basic_block_kernel_downsample, chunk=chunk)
        in_specs = [x_spec,
                    full2d(Cout, Cin), full2d(Cout, 1),
                    full2d(Cout, Cout), full2d(Cout, 1),
                    full2d(Cout, Cin), full2d(Cout, 1)]
        operands = (x3, w1, b1, w2, b2, wd, bd)
    else:
        kernel = functools.partial(_basic_block_kernel_identity, chunk=chunk)
        in_specs = [x_spec,
                    full2d(Cout, Cin), full2d(Cout, 1),
                    full2d(Cout, Cout), full2d(Cout, 1)]
        operands = (x3, w1, b1, w2, b2)

    cp_kwargs = dict(dimension_semantics=("parallel", "parallel"))
    if vmem_limit_bytes is not None:
        cp_kwargs["vmem_limit_bytes"] = vmem_limit_bytes

    out3 = pl.pallas_call(
        kernel,
        out_shape=jax.ShapeDtypeStruct((N, Cout, M), jnp.float32),
        grid_spec=pltpu.PrefetchScalarGridSpec(
            num_scalar_prefetch=0,
            grid=grid,
            in_specs=in_specs,
            out_specs=o_spec,
        ),
        compiler_params=pltpu.CompilerParams(**cp_kwargs),
    )(*operands)

    return out3.reshape(N, Cout, Ho, Wo)


# --------------------------------------------------------------------------
# Pure-JAX reference (mirrors the PyTorch module, inference-mode BN, f32)
# --------------------------------------------------------------------------
def basic_block_reference(x_nchw, params, downsample):
    eps = 1e-5

    def conv1x1(x, w, b, stride):
        if stride == 2:
            x = x[:, :, ::2, ::2]
        y = jnp.einsum("nchw,oc->nohw", x, w)
        return y + b[None, :, None, None]

    def bn(x, g, be, m, v):
        inv = g / jnp.sqrt(v + eps)
        return ((x - m[None, :, None, None]) * inv[None, :, None, None]
                + be[None, :, None, None])

    stride = 2 if downsample else 1
    h = conv1x1(x_nchw, params["w1"], params["b1"], stride)
    h = jnp.maximum(bn(h, params["g1"], params["be1"], params["m1"], params["v1"]), 0.0)
    y = conv1x1(h, params["w2"], params["b2"], 1)
    y = bn(y, params["g2"], params["be2"], params["m2"], params["v2"])
    if downsample:
        ident = conv1x1(x_nchw, params["wd"], params["bd"], 2)
        ident = bn(ident, params["gd"], params["bed"], params["md"], params["vd"])
    else:
        ident = x_nchw
    return jnp.maximum(y + ident, 0.0)


# --------------------------------------------------------------------------
# Param construction (PyTorch conv weight (Cout,Cin,1,1) stored as (Cout,Cin))
# --------------------------------------------------------------------------
def make_params(key, cin, cout, downsample):
    ks = jax.random.split(key, 13)
    p = {
        "w1": 0.1 * jax.random.normal(ks[0], (cout, cin), jnp.float32),
        "b1": 0.1 * jax.random.normal(ks[1], (cout,), jnp.float32),
        "g1": 1.0 + 0.1 * jax.random.normal(ks[2], (cout,), jnp.float32),
        "be1": 0.1 * jax.random.normal(ks[3], (cout,), jnp.float32),
        "m1": 0.1 * jax.random.normal(ks[4], (cout,), jnp.float32),
        "v1": jnp.abs(jax.random.normal(ks[5], (cout,), jnp.float32)) + 0.5,
        "w2": 0.1 * jax.random.normal(ks[6], (cout, cout), jnp.float32),
        "b2": 0.1 * jax.random.normal(ks[7], (cout,), jnp.float32),
        "g2": 1.0 + 0.1 * jax.random.normal(ks[8], (cout,), jnp.float32),
        "be2": 0.1 * jax.random.normal(ks[9], (cout,), jnp.float32),
        "m2": 0.1 * jax.random.normal(ks[10], (cout,), jnp.float32),
        "v2": jnp.abs(jax.random.normal(ks[11], (cout,), jnp.float32)) + 0.5,
    }
    if downsample:
        kd = jax.random.split(ks[12], 6)
        p.update({
            "wd": 0.1 * jax.random.normal(kd[0], (cout, cin), jnp.float32),
            "bd": 0.1 * jax.random.normal(kd[1], (cout,), jnp.float32),
            "gd": 1.0 + 0.1 * jax.random.normal(kd[2], (cout,), jnp.float32),
            "bed": 0.1 * jax.random.normal(kd[3], (cout,), jnp.float32),
            "md": 0.1 * jax.random.normal(kd[4], (cout,), jnp.float32),
            "vd": jnp.abs(jax.random.normal(kd[5], (cout,), jnp.float32)) + 0.5,
        })
    return p


if __name__ == "__main__":
    key = jax.random.PRNGKey(0)
    kx, kp1, kp2 = jax.random.split(key, 3)

    N, Cin, Cout, H, W = 2, 4, 8, 16, 16
    x = jax.random.normal(kx, (N, Cin, H, W), jnp.float32)

    # Case 1: downsample=True, 4 -> 8 channels, stride 2, bf16 MXU operands.
    params_ds = make_params(kp1, Cin, Cout, downsample=True)
    out_ds = basic_block_forward(x, params_ds, downsample=True)
    jax.block_until_ready(out_ds)
    ref_ds = basic_block_reference(x, params_ds, downsample=True)
    assert out_ds.shape == (N, Cout, H // 2, W // 2)
    assert jnp.allclose(out_ds, ref_ds, atol=5e-2, rtol=5e-2)

    # Case 2: downsample=False, identity shortcut (Cin == Cout), stride 1, bf16.
    params_id = make_params(kp2, Cin, Cin, downsample=False)
    out_id = basic_block_forward(x, params_id, downsample=False)
    jax.block_until_ready(out_id)
    ref_id = basic_block_reference(x, params_id, downsample=False)
    assert out_id.shape == (N, Cin, H, W)
    assert jnp.allclose(out_id, ref_id, atol=5e-2, rtol=5e-2)

    # Case 3: same kernels in full f32 (tight tolerance structural check).
    out_ds32 = basic_block_forward(x, params_ds, downsample=True,
                                   compute_dtype=jnp.float32)
    jax.block_until_ready(out_ds32)
    assert jnp.allclose(out_ds32, ref_ds, atol=1e-4, rtol=1e-4)
    out_id32 = basic_block_forward(x, params_id, downsample=False,
                                   compute_dtype=jnp.float32)
    jax.block_until_ready(out_id32)
    assert jnp.allclose(out_id32, ref_id, atol=1e-4, rtol=1e-4)

    print("KERNEL_OK")
</pallas_src>

<mosaic_0001>
module attributes {stable_mosaic.version = 11 : i64} {
  func.func @_basic_block_kernel_downsample(%arg0: i32, %arg1: i32, %arg2: memref<1x4x64xbf16, #tpu.memory_space<vmem>>, %arg3: memref<8x4xbf16, #tpu.memory_space<vmem>>, %arg4: memref<8x1xf32, #tpu.memory_space<vmem>>, %arg5: memref<8x8xbf16, #tpu.memory_space<vmem>>, %arg6: memref<8x1xf32, #tpu.memory_space<vmem>>, %arg7: memref<8x4xbf16, #tpu.memory_space<vmem>>, %arg8: memref<8x1xf32, #tpu.memory_space<vmem>>, %arg9: memref<1x8x64xf32, #tpu.memory_space<vmem>>) attributes {dimension_semantics = [#tpu.dimension_semantics<parallel>, #tpu.dimension_semantics<parallel>], iteration_bounds = array<i64: 2, 1>, scalar_prefetch = 0 : i64, scratch_operands = 0 : i64, tpu.core_type = #tpu.core_type<tc>, window_params = [{transform_indices = @transform_0, window_bounds = array<i64: 1, 4, 64>}, {pipeline_mode = #tpu.pipeline_mode<synchronous>, transform_indices = @transform_1, window_bounds = array<i64: 8, 4>}, {pipeline_mode = #tpu.pipeline_mode<synchronous>, transform_indices = @transform_2, window_bounds = array<i64: 8, 1>}, {pipeline_mode = #tpu.pipeline_mode<synchronous>, transform_indices = @transform_3, window_bounds = array<i64: 8, 8>}, {pipeline_mode = #tpu.pipeline_mode<synchronous>, transform_indices = @transform_4, window_bounds = array<i64: 8, 1>}, {pipeline_mode = #tpu.pipeline_mode<synchronous>, transform_indices = @transform_5, window_bounds = array<i64: 8, 4>}, {pipeline_mode = #tpu.pipeline_mode<synchronous>, transform_indices = @transform_6, window_bounds = array<i64: 8, 1>}, {transform_indices = @transform_7, window_bounds = array<i64: 1, 8, 64>}]} {
    %c0 = arith.constant 0 : index
    %c0_0 = arith.constant 0 : index
    %0 = vector.load %arg4[%c0, %c0_0] : memref<8x1xf32, #tpu.memory_space<vmem>>, vector<8x1xf32>
    %c0_1 = arith.constant 0 : index
    %c0_2 = arith.constant 0 : index
    %1 = vector.load %arg6[%c0_1, %c0_2] : memref<8x1xf32, #tpu.memory_space<vmem>>, vector<8x1xf32>
    %c0_3 = arith.constant 0 : index
    %c0_4 = arith.constant 0 : index
    %2 = vector.load %arg8[%c0_3, %c0_4] : memref<8x1xf32, #tpu.memory_space<vmem>>, vector<8x1xf32>
    %c0_5 = arith.constant 0 : index
    %c0_6 = arith.constant 0 : index
    %3 = vector.load %arg3[%c0_5, %c0_6] : memref<8x4xbf16, #tpu.memory_space<vmem>>, vector<8x4xbf16>
    %c0_7 = arith.constant 0 : index
    %c0_8 = arith.constant 0 : index
    %c0_9 = arith.constant 0 : index
    %4 = vector.load %arg2[%c0_7, %c0_8, %c0_9] : memref<1x4x64xbf16, #tpu.memory_space<vmem>>, vector<1x4x64xbf16>
    %5 = vector.shape_cast %4 : vector<1x4x64xbf16> to vector<4x64xbf16>
    %cst = arith.constant dense<0.000000e+00> : vector<8x64xf32>
    %6 = tpu.matmul %3, %5, %cst {dimension_numbers = #tpu.dot_dimension_numbers<[1], [0], [0], [1], [0, 0, 1, 1], [], []>} : vector<8x4xbf16>, vector<4x64xbf16>, vector<8x64xf32> -> vector<8x64xf32>
    %7 = vector.broadcast %0 : vector<8x1xf32> to vector<8x64xf32>
    %8 = arith.addf %6, %7 : vector<8x64xf32>
    %cst_10 = arith.constant 0.000000e+00 : f32
    %9 = vector.broadcast %cst_10 : f32 to vector<8x64xf32>
    %10 = arith.maximumf %8, %9 : vector<8x64xf32>
    %c0_11 = arith.constant 0 : index
    %c0_12 = arith.constant 0 : index
    %11 = vector.load %arg5[%c0_11, %c0_12] : memref<8x8xbf16, #tpu.memory_space<vmem>>, vector<8x8xbf16>
    %12 = arith.truncf %10 : vector<8x64xf32> to vector<8x64xbf16>
    %cst_13 = arith.constant dense<0.000000e+00> : vector<8x64xf32>
    %13 = tpu.matmul %11, %12, %cst_13 {dimension_numbers = #tpu.dot_dimension_numbers<[1], [0], [0], [1], [0, 0, 1, 1], [], []>} : vector<8x8xbf16>, vector<8x64xbf16>, vector<8x64xf32> -> vector<8x64xf32>
    %14 = vector.broadcast %1 : vector<8x1xf32> to vector<8x64xf32>
    %15 = arith.addf %13, %14 : vector<8x64xf32>
    %c0_14 = arith.constant 0 : index
    %c0_15 = arith.constant 0 : index
    %16 = vector.load %arg7[%c0_14, %c0_15] : memref<8x4xbf16, #tpu.memory_space<vmem>>, vector<8x4xbf16>
    %c0_16 = arith.constant 0 : index
    %c0_17 = arith.constant 0 : index
    %c0_18 = arith.constant 0 : index
    %17 = vector.load %arg2[%c0_16, %c0_17, %c0_18] : memref<1x4x64xbf16, #tpu.memory_space<vmem>>, vector<1x4x64xbf16>
    %18 = vector.shape_cast %17 : vector<1x4x64xbf16> to vector<4x64xbf16>
    %cst_19 = arith.constant dense<0.000000e+00> : vector<8x64xf32>
    %19 = tpu.matmul %16, %18, %cst_19 {dimension_numbers = #tpu.dot_dimension_numbers<[1], [0], [0], [1], [0, 0, 1, 1], [], []>} : vector<8x4xbf16>, vector<4x64xbf16>, vector<8x64xf32> -> vector<8x64xf32>
    %20 = vector.broadcast %2 : vector<8x1xf32> to vector<8x64xf32>
    %21 = arith.addf %19, %20 : vector<8x64xf32>
    %22 = arith.addf %15, %21 : vector<8x64xf32>
    %cst_20 = arith.constant 0.000000e+00 : f32
    %23 = vector.broadcast %cst_20 : f32 to vector<8x64xf32>
    %24 = arith.maximumf %22, %23 : vector<8x64xf32>
    %c0_21 = arith.constant 0 : index
    %c0_22 = arith.constant 0 : index
    %c0_23 = arith.constant 0 : index
    %25 = vector.load %arg9[%c0_21, %c0_22, %c0_23] : memref<1x8x64xf32, #tpu.memory_space<vmem>>, vector<1x8x64xf32>
    %26 = vector.shape_cast %25 : vector<1x8x64xf32> to vector<8x64xf32>
    %27 = vector.shape_cast %24 : vector<8x64xf32> to vector<1x8x64xf32>
    tpu.vector_store %arg9[%c0_21, %c0_22, %c0_23], %27 {strides = array<i32>} : memref<1x8x64xf32, #tpu.memory_space<vmem>>, vector<1x8x64xf32>,
    return
  }
  func.func @transform_0(%arg0: i32, %arg1: i32) -> (i32, i32, i32) {
    %c0_i32 = arith.constant 0 : i32
    %c0_i32_0 = arith.constant 0 : i32
    return %arg0, %c0_i32, %arg1 : i32, i32, i32
  }
  func.func @transform_1(%arg0: i32, %arg1: i32) -> (i32, i32) {
    %c0_i32 = arith.constant 0 : i32
    %c0_i32_0 = arith.constant 0 : i32
    %c0_i32_1 = arith.constant 0 : i32
    return %c0_i32, %c0_i32_0 : i32, i32
  }
  func.func @transform_2(%arg0: i32, %arg1: i32) -> (i32, i32) {
    %c0_i32 = arith.constant 0 : i32
    %c0_i32_0 = arith.constant 0 : i32
    %c0_i32_1 = arith.constant 0 : i32
    return %c0_i32, %c0_i32_0 : i32, i32
  }
  func.func @transform_3(%arg0: i32, %arg1: i32) -> (i32, i32) {
    %c0_i32 = arith.constant 0 : i32
    %c0_i32_0 = arith.constant 0 : i32
    %c0_i32_1 = arith.constant 0 : i32
    return %c0_i32, %c0_i32_0 : i32, i32
  }
  func.func @transform_4(%arg0: i32, %arg1: i32) -> (i32, i32) {
    %c0_i32 = arith.constant 0 : i32
    %c0_i32_0 = arith.constant 0 : i32
    %c0_i32_1 = arith.constant 0 : i32
    return %c0_i32, %c0_i32_0 : i32, i32
  }
  func.func @transform_5(%arg0: i32, %arg1: i32) -> (i32, i32) {
    %c0_i32 = arith.constant 0 : i32
    %c0_i32_0 = arith.constant 0 : i32
    %c0_i32_1 = arith.constant 0 : i32
    return %c0_i32, %c0_i32_0 : i32, i32
  }
  func.func @transform_6(%arg0: i32, %arg1: i32) -> (i32, i32) {
    %c0_i32 = arith.constant 0 : i32
    %c0_i32_0 = arith.constant 0 : i32
    %c0_i32_1 = arith.constant 0 : i32
    return %c0_i32, %c0_i32_0 : i32, i32
  }
  func.func @transform_7(%arg0: i32, %arg1: i32) -> (i32, i32, i32) {
    %c0_i32 = arith.constant 0 : i32
    %c0_i32_0 = arith.constant 0 : i32
    return %arg0, %c0_i32, %arg1 : i32, i32, i32
  }
}

</mosaic_0001>

<bundles_post_ra>
// kernel: tpu_custom_call.1
= control target key start
LH: loop header
LB: loop body
LE: loop exit
PB: predicated region body
PF: predicated region fallthrough
CT: control target
= control target key end

     0   :  { %12 = vsyncpa [#allocation3], 0  ;;  %s899_s0 = inlined_call_operand.vmem [shape: bf16[2,4,64], index: 0, kind: input, shape index: {}]   ;;  %s900_s1 = inlined_call_operand.vmem [shape: bf16[8,4], index: 1, kind: input, shape index: {}]   ;;  %s901_s2 = inlined_call_operand.vmem [shape: f32[8,1], index: 2, kind: input, shape index: {}]   ;;  %s902_s3 = inlined_call_operand.vmem [shape: bf16[8,8], index: 3, kind: input, shape index: {}]   ;;  %s903_s4 = inlined_call_operand.vmem [shape: f32[8,1], index: 4, kind: input, shape index: {}]   ;;  %s904_s5 = inlined_call_operand.vmem [shape: bf16[8,4], index: 5, kind: input, shape index: {}]   ;;  %s905_s6 = inlined_call_operand.vmem [shape: f32[8,1], index: 6, kind: input, shape index: {}]   ;;  %s906_s7 = inlined_call_operand.hbm [shape: f32[2,8,64], index: 7, kind: output, shape index: {}]  }
   0x1   :  { %14 = vsyncpa [#allocation3 + $0x1], 0  ;;  %s773_s24 = smov 0   ;;  %s775_s25 = smov 0  }
   0x2   :  { %s777_s26 = smov 0   ;;  %s779_s27 = smov 0  }
   0x3   :  { %s781_s28 = smov 0   ;;  %s783_s29 = smov 0  }
   0x4 LB: > { %s553_s30 = sadd.s32 4294967295, %s727_s29   ;;  %s554_s8 = sadd.s32 4294967294, %s727_s29   ;;  %s727_s29 = sphi %s783_s29, %s20_s29   ;;  %s723_s28 = sphi %s781_s28, %s913_s28   ;;  %s719_s27 = sphi %s779_s27, %s912_s27   ;;  %s715_s26 = sphi %s777_s26, %s911_s26   ;;  %s711_s25 = sphi %s775_s25, %s910_s25   ;;  %s707_s24 = sphi %s773_s24, %s909_s24  }
   0x5   : > { %s32_s9 = sadd.s32 1, %s723_s28  ;;  %s195_s10 = sadd.s32 1, %s715_s26 }
   0x6   : > { %p34_p0 = scmp.ge.s32.totalorder %s32_s9, 2  ;;  %p205_p1 = scmp.ne.s32.totalorder %s715_s26, %s711_s25 }
   0x7   : > { %p206_p2 = scmp.eq.s32.totalorder %s553_s30, 1  ;;  %p211_p3 = scmp.ne.s32.totalorder %s711_s25, %s707_s24 }
   0x8   : > { %s915_s9 = smov (%p34_p0, %s32_s9), 0  ;;  %p212_p5 = scmp.eq.s32.totalorder %s554_s8, 1 }
   0x9   : > { %p813_p4 = por %p206_p2, %p205_p1  ;;  %s190_s12 = ssub.s32 %s723_s28, %s915_s9 }
   0xa   : > { %p557_p6 = scmp.ge.s32.totalorder %s727_s29, 1  ;;  %p193_p7 = scmp.eq.s32.totalorder %s190_s12, 0 }
   0xb   : > { %p820_p8 = por %p212_p5, %p211_p3  ;;  %p258_p9 = scmp.lt.s32.totalorder %s727_s29, 3 }
   0xc   : > { %s826_s14 = scalar_select %p193_p7, %s715_s26, %s195_s10  }
   0xd   : > { %p259_p10 = pnand %p557_p6, %p258_p9 }
   0xe   : > { %p292_p11 = scmp.lt.s32.totalorder (!%p259_p10), %s719_s27, 1  ;;  %s289_s19 = sand.u32 (!%p259_p10), 1, %s711_s25  }
   0xf   : > { %262 = sbr.rel (%p259_p10) target bundleno = 444 (0x1bc), region = 48  ;;  %s558_s20 = sshll.u32 (!%p259_p10), %s289_s19, 3 }
  0x10   : > { %s564_s21 = sshll.u32 (!%p259_p10), %s719_s27, 7  ;;  %s291_s22 = scalar_lea.vmem (!%p259_p10), [#allocation2], %s558_s20 }
  0x11   : > { %s859_s10 = scalar_lea.hbm (!%p259_p10), %s906_s7, %s564_s21  ;;  %s468_s12 = scalar_lea.sflag (!%p259_p10), [#allocation3], %s289_s19 }
  0x14   : > { %v729_v0 = vmov 0.0   ;;  %vm730_vm0 = vmmov 0   ;;  %v300_v1 = vld [vmem:[%s901_s2] sm:$0xff]  ;;  %s293_s17 = scalar_select %p292_p11, %s719_s27, 1  ;;  %v731_v2 = vmov 0   ;;  %vm314_vm1 = vcmask 1041408  }
  0x15   : > { %573 = vmatprep.subr.bf16.mxu0 %v729_v0  ;;  %575 = vmatprep.mubr.msk.bf16.mxu0 %vm730_vm0, %v729_v0  ;;  %v301_v3 = vld [vmem:[%s903_s4] sm:$0xff]  ;;  %vm310_vm2 = vcmask 31744   ;;  %vm370_vm3 = vcmask 1043456   ;;  %vm366_vm4 = vcmask 64512   ;;  %vm465_vm5 = vcmask 523264   ;;  %s732_s27 = smov [#allocation2]  }
  0x16   : > { %649 = vset.pattern.permute.xlu0 %v731_v2  ;;  %579 = vmatprep.subr.bf16.mxu1 %v729_v0  ;;  %s559_s18 = sshll.u32 %s293_s17, 1  ;;  %v303_v6 = vld [vmem:[%s900_s1] sm:$0xf]  ;;  %s655_s16 = sshll.u32 %s732_s27, 4  ;;  %s656_s16 = int_to_ptr.vmem [resolvable:$false] %s655_s16 }
  0x17   : > { %307 = vperm.xlu0 %649, %v300_v1   ;;  %581 = vmatprep.mubr.msk.bf16.mxu1 %vm730_vm0, %v729_v0  ;;  %s298_s23 = scalar_lea.vmem %s899_s0, %s559_s18  ;;  %v414_v7 = vld [vmem:[%s904_s5] sm:$0xf]  ;;  %s657_s17 = scalar_lea.vmem %s656_s16, 256 }
  0x18   : > { %650 = vset.pattern.permute.xlu1 %v731_v2  ;;  %v304_v4 = vld [vmem:[%s298_s23] sm:$0x3]  ;;  %s482_s23 = sshll.u32 %s291_s22, 4  ;;  %s483_s23 = int_to_ptr.vmem [resolvable:$true] %s482_s23 }
  0x19   : > { %v316_v5 = vsel %vm314_vm1, %v304_v4, 0  ;;  %v302_v8 = vld [vmem:[%s905_s6] sm:$0xff]  ;;  %s651_s15 = scalar_lea.vmem %s483_s23, 128  ;;  %p658_p1 = scmp.lt.s32.totalorder %s483_s23, %s656_s16 }
  0x1a   : > { %574 = vmatpush3.bf16.msra.mxu0 %v316_v5  ;;  %417 = vperm.xlu1 %650, %v302_v8   ;;  %v359_v18 = vld [vmem:[%s902_s3] sm:$0xf]  ;;  %p652_p12 = scmp.ne.s32.totalorder %s483_s23, %s651_s15  ;;  %p659_p2 = scmp.lt.s32.totalorder %s657_s17, %s651_s15 }
  0x1b   : > { %363 = vperm.xlu0 %649, %v301_v3   ;;  %585 = vmatprep.subr.bf16.mxu0 %v729_v0 }
  0x1c   : > { %p653_p13 = pnand %p652_p12, %p813_p4  ;;  %p660_p3 = por %p659_p2, %p658_p1 }
  0x1d   : > { %576 = vmatmul.mubr.msk.bf16.vlgmr.msra.gmra.mxu0 %vm310_vm2, %v303_v6 }
  0x1e   : > { %586 = vmatpush3.bf16.msra.mxu0 %v316_v5  ;;  %587 = vmatprep.mubr.msk.bf16.mxu0 %vm730_vm0, %v729_v0  ;;  %p654_p0 = pneg %p653_p13 }
  0x20   : > { %p661_p5 = pnand %p660_p3, %p654_p0 }
  0x25   : > { %588 = vmatmul.mubr.msk.bf16.vlgmr.msra.gmra.mxu0 %vm310_vm2, %v414_v7 }
  0x92   : > { %v308_v9 = vpop.permute.xlu0 %307 }
  0x95   : > { %v418_v23 = vpop.permute.xlu1 %417 }
  0x96   : > { %v364_v25 = vpop.permute.xlu0 %363 }
  0xdd   : > { %v352_v10 = vpop.f32.mrf.mxu0 }
  0xde   : > { %v353_v11 = vadd.f32 %v352_v10, %v308_v9 }
  0xdf   : > { %v577_v12 = vpop.f32.mrf.mxu0 }
  0xe0   : > { %v358_v13 = vmax.f32 %v353_v11, 0.0 }
  0xe1   : > { %v355_v14 = vpop.f32.mrf.mxu0 }
  0xe2   : > { %v360_v15 = vpack.c.bf16 %v358_v13, %v358_v13 }
  0xe3   : > { %v578_v16 = vpop.f32.mrf.mxu0 }
  0xe4   : > { %v372_v17 = vsel %vm370_vm3, %v360_v15, 0 }
  0xe5   : > { %580 = vmatpush3.bf16.msra.mxu1 %v372_v17  ;;  %v457_v19 = vpop.f32.mrf.mxu0 }
  0xe6   : > { %v458_v24 = vadd.f32 %v457_v19, %v418_v23 }
  0xe7   : > { %v589_v20 = vpop.f32.mrf.mxu0 }
  0xe8   : > { %582 = vmatmul.mubr.msk.bf16.vlgmr.msra.gmra.mxu1 %vm366_vm4, %v359_v18 }
  0xe9   : > { %v460_v21 = vpop.f32.mrf.mxu0 }
  0xeb   : > { %v590_v22 = vpop.f32.mrf.mxu0 }
 0x1a8   : > { %v408_v26 = vpop.f32.mrf.mxu1 }
 0x1a9   : > { %v409_v27 = vadd.f32 %v408_v26, %v364_v25 }
 0x1aa   : > { %v583_v28 = vpop.f32.mrf.mxu1 }
 0x1ab   : > { %v463_v29 = vadd.f32 %v458_v24, %v409_v27 }
 0x1ac   : > { %v411_v30 = vpop.f32.mrf.mxu1 }
 0x1ad   : > { %v464_v31 = vmax.f32 %v463_v29, 0.0 }
 0x1ae   : > { %v584_v32 = vpop.f32.mrf.mxu1 }
 0x1af   : > { %466 = vst.msk [vmem:[%s291_s22] sm:$0xff] %vm465_vm5, %v464_v31 }
 0x1b0   : > { %664 = shalt.err (!%p661_p5)
}
 0x1b1   : > { %s665_s18 = scalar_lea.hbm %s859_s10, 128  ;;  %s669_s21 = scalar_lea.hbm %s906_s7, 256 }
 0x1b2   : > { %p666_p6 = scmp.ne.s32.totalorder %s859_s10, %s665_s18  ;;  %p670_p10 = scmp.lt.s32.totalorder %s859_s10, %s906_s7 }
 0x1b3   : > { %p671_p11 = scmp.lt.s32.totalorder %s669_s21, %s665_s18 }
 0x1b4   : > { %p667_p7 = pnand %p666_p6, %p813_p4 }
 0x1b5   : > { %p672_p12 = por %p671_p11, %p670_p10 }
 0x1b6   : > { %p668_p9 = pneg %p667_p7 }
 0x1b8   : > { %p673_p13 = pnand %p672_p12, %p668_p9 }
 0x1ba   : > { %676 = shalt.err (!%p673_p13)
}
 0x1bb   : > { %591 = dma.vmem_to_hbm [thread:$0]  (%p813_p4), %s483_s23, 128, %s859_s10, %s468_s12  }
 0x1bc PF: > { %p597_p0 = scmp.ge.s32.totalorder %s727_s29, 2  ;;  %s494_s8 = sand.u32 1, %s707_s24  }
 0x1bd   : > { %s495_s15 = scalar_lea.sflag [#allocation3], %s494_s8 }
 0x1be   : > { %p594_p1 = pnand %p597_p0, %p820_p8 }
 0x1c0   : > { %p595_p2 = pneg %p594_p1 }
 0x1c2   : > { %702 = dma.done.wait (%p595_p2), %s495_s15, 128  }
 0x1c3   : > { %704 = vsyncadd (%p595_p2), %s495_s15, 4294967168  ;;  %s20_s29 = sadd.s32 1, %s727_s29   ;;  %s909_s24 = smov %s711_s25 }
 0x1c4   : > { %p17_p3 = scmp.ge.s32.totalorder %s20_s29, 4   ;;  %s910_s25 = smov %s715_s26 }
 0x1c5   : > { %s911_s26 = smov %s826_s14  ;;  %s912_s27 = smov %s723_s28 }
 0x1c6   : > { %s913_s28 = smov %s915_s9  ;;  %19 = sbr.rel (!%p17_p3) target bundleno = 4 (0x4), region = 83 }
 0x1cb   :  { %500 = vsyncpa [#allocation3], 1 }
 0x1cc   :  { %502 = vsyncpa [#allocation3 + $0x1], 1 }

</bundles_post_ra>
